<compile_context>
chip_gen: v7x
topology: tpu7x:2x2x1
jax: 0.10.0
libtpu: 0.0.40
codegen_flags: <defaults>
</compile_context>

<pallas_src>
import functools

import jax
import jax.numpy as jnp
from jax import lax
from jax.experimental import pallas as pl
from jax.experimental.pallas import tpu as pltpu

_LANE = 128
_SUBLANE = 8


def _weighted_bce_partial_kernel(x_ref, y_ref, out_ref, *,
                                 ink_weight, background_weight,
                                 tile_rows, sub_rows):
    """Accumulates sum(w * bce(x, y)) over this (tile_rows, 128) tile into the
    resident (1, 8, 128) output block (one block per 'partial' / TensorCore)."""

    @pl.when(pl.program_id(1) == 0)
    def _():
        out_ref[...] = jnp.zeros_like(out_ref)

    ink = float(ink_weight)
    bg = float(background_weight)

    def slab_sum(x, y):
        # Per-element weight and numerically stable BCE-with-logits:
        #   w   = y * (ink - bg) + bg
        #   bce = max(x, 0) - x*y + log1p(exp(-|x|))
        # TODO(synk): if a v7x bundle dump shows EUP as the binding slot, evaluate
        # exp/log1p in bf16 (native EUP rate there) while keeping w*bce in f32.
        xf = x.astype(jnp.float32)
        yf = y.astype(jnp.float32)
        w = yf * (ink - bg) + bg
        bce = jnp.maximum(xf, 0.0) - xf * yf + jnp.log1p(jnp.exp(-jnp.abs(xf)))
        c = w * bce
        # (rows,128) -> (rows//8, 8, 128) is a free leading-dim reshape; the sum
        # over axis 0 is plain VALU vreg adds into an (8,128) value.
        return c.reshape(-1, _SUBLANE, _LANE).sum(axis=0)

    n_full = tile_rows // sub_rows
    rem_rows = tile_rows % sub_rows

    acc = jnp.zeros((_SUBLANE, _LANE), jnp.float32)
    if n_full > 0:
        def body(j, a):
            r0 = pl.multiple_of(j * sub_rows, sub_rows)
            return a + slab_sum(x_ref[pl.ds(r0, sub_rows), :],
                                y_ref[pl.ds(r0, sub_rows), :])
        acc = lax.fori_loop(0, n_full, body, acc, unroll=min(4, n_full))
    if rem_rows:
        r0 = n_full * sub_rows
        acc = acc + slab_sum(x_ref[pl.ds(r0, rem_rows), :],
                             y_ref[pl.ds(r0, rem_rows), :])

    out_ref[...] += acc[None]


def _loss_sum_flat(x, y, ink, bg):
    """Plain-jnp sum(w * bce) for the small ragged tail (and tiny-input fallback)."""
    xf = x.astype(jnp.float32)
    yf = y.astype(jnp.float32)
    w = yf * (ink - bg) + bg
    bce = jnp.maximum(xf, 0.0) - xf * yf + jnp.log1p(jnp.exp(-jnp.abs(xf)))
    return jnp.sum(w * bce, dtype=jnp.float32)


def _num_tensorcores():
    # One output partial per TensorCore: v7x has 2 TCs/chip, v5e/v6e have 1.
    try:
        kind = jax.local_devices()[0].device_kind.lower()
    except Exception:
        return 1
    return 2 if "v7" in kind else 1


def custom_weighted_ce_loss(logits, labels, ink_weight=10.0, background_weight=1.0, *,
                            tile_rows=4096, sub_rows=256, num_partials=None):
    """Weighted binary cross-entropy with logits, mean reduction (scalar f32).

    Labels/logits may be any dtype (bool/int8/bf16/f32); casting happens in-kernel,
    so narrow label dtypes reduce HBM traffic with no wrapper-side astype pass.
    """
    assert logits.shape == labels.shape
    n_true = int(logits.size)
    assert n_true > 0

    ink = float(ink_weight)
    bg = float(background_weight)

    x_flat = logits.reshape(-1)   # contiguous flatten: free in XLA
    y_flat = labels.reshape(-1)

    if num_partials is None:
        num_partials = _num_tensorcores()

    rem = n_true % _LANE
    rows = n_true // _LANE        # number of full 128-lane rows

    # Partition / tile sizing: one partial per TensorCore; the largest row-tile
    # (multiple of 8) the data supports, capped at tile_rows (default 4096 rows
    # = 2 MiB f32 per stream per step).
    np_ = max(1, min(int(num_partials), rows // _SUBLANE)) if rows >= _SUBLANE else 0
    if np_ > 0:
        per_part = (rows // np_) // _SUBLANE * _SUBLANE
        tr = max(_SUBLANE, min(int(tile_rows), per_part))
        tr = (tr // _SUBLANE) * _SUBLANE
        chunk_rows = np_ * tr
        steps = rows // chunk_rows
    else:
        tr = 0
        steps = 0

    if steps == 0:
        # Input smaller than one chunk: plain fused jnp, no kernel launch.
        total = _loss_sum_flat(x_flat, y_flat, ink, bg)
        return (total / jnp.float32(n_true)).astype(jnp.float32)

    rows_main = steps * np_ * tr
    n_main = rows_main * _LANE

    if rem == 0:
        # Free full-array reshape; the grid only touches the first rows_main rows,
        # so there is no padding and no in-kernel masking anywhere.
        x2 = x_flat.reshape(rows, _LANE)
        y2 = y_flat.reshape(rows, _LANE)
    else:
        # TODO(synk): non-128-divisible sizes still pay one bulk prefix-slice copy
        # here; avoiding it needs a manual-DMA (memory_space=pl.ANY) gather path.
        x2 = x_flat[:n_main].reshape(rows_main, _LANE)
        y2 = y_flat[:n_main].reshape(rows_main, _LANE)

    sub = max(_SUBLANE, min(int(sub_rows), tr))
    sub = (sub // _SUBLANE) * _SUBLANE

    kernel = functools.partial(
        _weighted_bce_partial_kernel,
        ink_weight=ink, background_weight=bg,
        tile_rows=tr, sub_rows=sub)

    in_map = lambda p, s: (p * steps + s, 0)

    bx = tr * _LANE * x2.dtype.itemsize
    by = tr * _LANE * y2.dtype.itemsize
    out_bytes = np_ * _SUBLANE * _LANE * 4
    # 2 streams x 2 pipeline buffers + output block + sub-slab temps + headroom.
    vmem_limit = int(2 * (bx + by) + out_bytes + (8 << 20))

    n_kernel = rows_main * _LANE
    cost = pl.CostEstimate(
        flops=12 * n_kernel,
        transcendentals=2 * n_kernel,
        bytes_accessed=n_kernel * (x2.dtype.itemsize + y2.dtype.itemsize) + out_bytes)

    partials = pl.pallas_call(
        kernel,
        out_shape=jax.ShapeDtypeStruct((np_, _SUBLANE, _LANE), jnp.float32),
        grid_spec=pltpu.PrefetchScalarGridSpec(
            num_scalar_prefetch=0,
            grid=(np_, steps),
            in_specs=[
                pl.BlockSpec((tr, _LANE), in_map),
                pl.BlockSpec((tr, _LANE), in_map),
            ],
            out_specs=pl.BlockSpec((1, _SUBLANE, _LANE), lambda p, s: (p, 0, 0)),
        ),
        compiler_params=pltpu.CompilerParams(
            dimension_semantics=("parallel", "arbitrary"),
            vmem_limit_bytes=vmem_limit),
        cost_estimate=cost,
    )(x2, y2)

    total = jnp.sum(partials, dtype=jnp.float32)

    if n_main < n_true:
        # Ragged tail: small slice + fused jnp reduction instead of padding both
        # HBM streams (which would add a full read+write pass over the inputs).
        total = total + _loss_sum_flat(x_flat[n_main:], y_flat[n_main:], ink, bg)

    return (total / jnp.float32(n_true)).astype(jnp.float32)


def _reference_loss(logits, labels, ink_weight=10.0, background_weight=1.0):
    x = logits.astype(jnp.float32)
    y = labels.astype(jnp.float32)
    w = y * (ink_weight - background_weight) + background_weight
    bce = jnp.maximum(x, 0.0) - x * y + jnp.log1p(jnp.exp(-jnp.abs(x)))
    return jnp.mean(w * bce)


if __name__ == "__main__":
    key = jax.random.PRNGKey(0)
    k1, k2 = jax.random.split(key)

    # NCHW inputs consistent with a segmentation-style use: (B, C, H, W)
    shape = (2, 4, 16, 16)
    logits = jax.random.normal(k1, shape, dtype=jnp.float32)
    labels = (jax.random.uniform(k2, shape) > 0.7).astype(jnp.float32)

    loss = custom_weighted_ce_loss(logits, labels,
                                   ink_weight=10.0, background_weight=1.0)
    loss = jax.block_until_ready(loss)

    ref = _reference_loss(logits, labels, 10.0, 1.0)
    assert jnp.allclose(loss, ref, rtol=1e-5, atol=1e-5), (loss, ref)

    print("KERNEL_OK")
</pallas_src>

<mosaic_0001>
module attributes {stable_mosaic.version = 11 : i64} {
  func.func @_weighted_bce_partial_kernel(%arg0: i32, %arg1: i32, %arg2: memref<16x128xf32, #tpu.memory_space<vmem>>, %arg3: memref<16x128xf32, #tpu.memory_space<vmem>>, %arg4: memref<1x8x128xf32, #tpu.memory_space<vmem>>) attributes {dimension_semantics = [#tpu.dimension_semantics<parallel>, #tpu.dimension_semantics<arbitrary>], iteration_bounds = array<i64: 1, 1>, scalar_prefetch = 0 : i64, scratch_operands = 0 : i64, tpu.core_type = #tpu.core_type<tc>, window_params = [{transform_indices = @transform_0, window_bounds = array<i64: 16, 128>}, {transform_indices = @transform_1, window_bounds = array<i64: 16, 128>}, {transform_indices = @transform_2, window_bounds = array<i64: 1, 8, 128>}]} {
    %c0_i32 = arith.constant 0 : i32
    %0 = arith.cmpi eq, %arg1, %c0_i32 : i32
    %1 = arith.extui %0 : i1 to i32
    %c0_i32_0 = arith.constant 0 : i32
    %2 = arith.cmpi ne, %1, %c0_i32_0 : i32
    scf.if %2 {
      %cst_14 = arith.constant 0.000000e+00 : f32
      %32 = vector.broadcast %cst_14 : f32 to vector<1x8x128xf32>
      %c0_15 = arith.constant 0 : index
      %c0_16 = arith.constant 0 : index
      %c0_17 = arith.constant 0 : index
      %33 = vector.load %arg4[%c0_15, %c0_16, %c0_17] : memref<1x8x128xf32, #tpu.memory_space<vmem>>, vector<1x8x128xf32>
      tpu.vector_store %arg4[%c0_15, %c0_16, %c0_17], %32 {strides = array<i32>} : memref<1x8x128xf32, #tpu.memory_space<vmem>>, vector<1x8x128xf32>,
    } else {
    }
    %cst = arith.constant 0.000000e+00 : f32
    %3 = vector.broadcast %cst : f32 to vector<8x128xf32>
    %c0_i32_1 = arith.constant 0 : i32
    %c16_i32 = arith.constant 16 : i32
    %4 = arith.muli %c0_i32_1, %c16_i32 : i32
    %5 = tpu.assume_multiple %4, 16 : i32
    %6 = arith.index_cast %5 : i32 to index
    %c0 = arith.constant 0 : index
    %7 = vector.load %arg2[%6, %c0] : memref<16x128xf32, #tpu.memory_space<vmem>>, vector<16x128xf32>
    %8 = arith.index_cast %5 : i32 to index
    %c0_2 = arith.constant 0 : index
    %9 = vector.load %arg3[%8, %c0_2] : memref<16x128xf32, #tpu.memory_space<vmem>>, vector<16x128xf32>
    %cst_3 = arith.constant 9.000000e+00 : f32
    %10 = vector.broadcast %cst_3 : f32 to vector<16x128xf32>
    %11 = arith.mulf %9, %10 : vector<16x128xf32>
    %cst_4 = arith.constant 1.000000e+00 : f32
    %12 = vector.broadcast %cst_4 : f32 to vector<16x128xf32>
    %13 = arith.addf %11, %12 : vector<16x128xf32>
    %cst_5 = arith.constant 0.000000e+00 : f32
    %14 = vector.broadcast %cst_5 : f32 to vector<16x128xf32>
    %15 = arith.maximumf %7, %14 : vector<16x128xf32>
    %16 = arith.mulf %7, %9 : vector<16x128xf32>
    %17 = arith.subf %15, %16 : vector<16x128xf32>
    %18 = math.absf %7 : vector<16x128xf32>
    %cst_6 = arith.constant 0.000000e+00 : f32
    %19 = vector.broadcast %cst_6 : f32 to vector<16x128xf32>
    %20 = arith.subf %19, %18 : vector<16x128xf32>
    %21 = math.exp %20 : vector<16x128xf32>
    %22 = math.log1p %21 : vector<16x128xf32>
    %23 = arith.addf %17, %22 : vector<16x128xf32>
    %24 = arith.mulf %13, %23 : vector<16x128xf32>
    %25 = vector.shape_cast %24 : vector<16x128xf32> to vector<2x8x128xf32>
    %cst_7 = arith.constant dense<0.000000e+00> : vector<8x128xf32>
    %26 = vector.multi_reduction <add>, %25, %cst_7 [0] : vector<2x8x128xf32> to vector<8x128xf32>
    %27 = arith.addf %3, %26 : vector<8x128xf32>
    %c1_i32 = arith.constant 1 : i32
    %c0_8 = arith.constant 0 : index
    %c0_9 = arith.constant 0 : index
    %c0_10 = arith.constant 0 : index
    %28 = vector.load %arg4[%c0_8, %c0_9, %c0_10] : memref<1x8x128xf32, #tpu.memory_space<vmem>>, vector<1x8x128xf32>
    %29 = vector.shape_cast %27 : vector<8x128xf32> to vector<1x8x128xf32>
    %30 = arith.addf %28, %29 : vector<1x8x128xf32>
    %c0_11 = arith.constant 0 : index
    %c0_12 = arith.constant 0 : index
    %c0_13 = arith.constant 0 : index
    %31 = vector.load %arg4[%c0_11, %c0_12, %c0_13] : memref<1x8x128xf32, #tpu.memory_space<vmem>>, vector<1x8x128xf32>
    tpu.vector_store %arg4[%c0_11, %c0_12, %c0_13], %30 {strides = array<i32>} : memref<1x8x128xf32, #tpu.memory_space<vmem>>, vector<1x8x128xf32>,
    return
  }
  func.func @transform_0(%arg0: i32, %arg1: i32) -> (i32, i32) {
    %c1_i32 = arith.constant 1 : i32
    %0 = arith.muli %arg0, %c1_i32 : i32
    %1 = arith.addi %0, %arg1 : i32
    %c0_i32 = arith.constant 0 : i32
    %c0_i32_0 = arith.constant 0 : i32
    return %1, %c0_i32 : i32, i32
  }
  func.func @transform_1(%arg0: i32, %arg1: i32) -> (i32, i32) {
    %c1_i32 = arith.constant 1 : i32
    %0 = arith.muli %arg0, %c1_i32 : i32
    %1 = arith.addi %0, %arg1 : i32
    %c0_i32 = arith.constant 0 : i32
    %c0_i32_0 = arith.constant 0 : i32
    return %1, %c0_i32 : i32, i32
  }
  func.func @transform_2(%arg0: i32, %arg1: i32) -> (i32, i32, i32) {
    %c0_i32 = arith.constant 0 : i32
    %c0_i32_0 = arith.constant 0 : i32
    %c0_i32_1 = arith.constant 0 : i32
    return %arg0, %c0_i32, %c0_i32_0 : i32, i32, i32
  }
}

</mosaic_0001>

<bundles_post_ra>
// kernel: tpu_custom_call.1
= control target key start
LH: loop header
LB: loop body
LE: loop exit
PB: predicated region body
PF: predicated region fallthrough
CT: control target
= control target key end

     0   :  { %7 = vsyncpa [#allocation3], 0  ;;  %s264_s0 = inlined_call_operand.hbm [shape: f32[16,128], index: 0, kind: input, shape index: {}]   ;;  %s265_s1 = inlined_call_operand.hbm [shape: f32[16,128], index: 1, kind: input, shape index: {}]   ;;  %s266_s2 = inlined_call_operand.hbm [shape: f32[1,8,128], index: 2, kind: output, shape index: {}]  }
   0x1   :  { %8 = vsyncpa [#allocation6], 0 }
   0x2   :  { %9 = vsyncpa [#allocation4], 0  ;;  %s208_s9 = smov [#allocation2]   ;;  %s136_s13 = scalar_lea.hbm %s264_s0, 256 }
   0x3   :  { %s19_s10 = sshll.u32 %s208_s9, 4  ;;  %p137_p0 = scmp.ne.s32.totalorder %s264_s0, %s136_s13  ;;  %s20_s10 = int_to_ptr.vmem [resolvable:$true] %s19_s10 }
   0x4   :  { %p140_p1 = scmp.lt.u32.totalorder %s136_s13, %s264_s0 }
   0x6   :  { %p142_p2 = pnand %p140_p1, %p137_p0 }
   0x8   :  { %145 = shalt.err (!%p142_p2)
}
   0x9   :  { %s146_s18 = scalar_lea.vmem %s20_s10, 256  ;;  %p151_p4 = scmp.lt.s32.totalorder %s20_s10, %s20_s10 }
   0xa   :  { %p147_p3 = scmp.ne.s32.totalorder %s20_s10, %s146_s18  ;;  %p152_p5 = scmp.lt.s32.totalorder %s146_s18, %s146_s18 }
   0xc   :  { %p153_p6 = por %p152_p5, %p151_p4 }
   0xe   :  { %p154_p7 = pnand %p153_p6, %p147_p3 }
  0x10   :  { %157 = shalt.err (!%p154_p7)
}
  0x11   :  { %s209_s19 = smov 128   ;;  %s210_s20 = smov 8  }
  0x12   :  { %25 = dma.hbm_to_vmem [thread:$0]  %s264_s0, 256, %s20_s10, [#allocation3], %s209_s19, %s209_s19, %s210_s20  }
  0x13   :  { %s211_s23 = smov [#allocation5]   ;;  %s158_s27 = scalar_lea.hbm %s265_s1, 256 }
  0x14   :  { %s35_s24 = sshll.u32 %s211_s23, 4  ;;  %p159_p8 = scmp.ne.s32.totalorder %s265_s1, %s158_s27  ;;  %s36_s24 = int_to_ptr.vmem [resolvable:$true] %s35_s24 }
  0x15   :  { %p162_p9 = scmp.lt.u32.totalorder %s158_s27, %s265_s1 }
  0x17   :  { %p164_p10 = pnand %p162_p9, %p159_p8 }
  0x19   :  { %167 = shalt.err (!%p164_p10)
}
  0x1a   :  { %s168_s4 = scalar_lea.vmem %s36_s24, 256  ;;  %p173_p12 = scmp.lt.s32.totalorder %s36_s24, %s36_s24 }
  0x1b   :  { %p169_p11 = scmp.ne.s32.totalorder %s36_s24, %s168_s4  ;;  %p174_p13 = scmp.lt.s32.totalorder %s168_s4, %s168_s4 }
  0x1d   :  { %p175_p0 = por %p174_p13, %p173_p12 }
  0x1f   :  { %p176_p1 = pnand %p175_p0, %p169_p11 }
  0x21   :  { %179 = shalt.err (!%p176_p1)
}
  0x22   :  { %41 = dma.hbm_to_vmem [thread:$0]  %s265_s1, 256, %s36_s24, [#allocation6], %s209_s19, %s209_s19, %s210_s20  }
  0x23   :  { %202 = dma.done.wait [#allocation3], 256  }
  0x24   :  { %203 = vsyncadd [#allocation3], 4294967040 }
  0x25   :  { %204 = dma.done.wait [#allocation6], 256  }
  0x26   :  { %205 = vsyncadd [#allocation6], 4294967040  ;;  %v57_v0 = vld [vmem:[#allocation2] sm:$0xff]  ;;  %v58_v1 = vld [vmem:[#allocation2 + $0x8] sm:$0xff]  ;;  %s212_s1 = smov [#allocation7]  }
  0x27   :  { %v71_v2 = vand.u32 2147483647, %v57_v0  ;;  %v72_v3 = vand.u32 2147483647, %v58_v1  ;;  %v59_v14 = vld [vmem:[#allocation5] sm:$0xff]  ;;  %v60_v15 = vld [vmem:[#allocation5 + $0x8] sm:$0xff] }
  0x28   :  { %v65_v17 = vmax.f32 %v57_v0, 0.0  ;;  %v67_v18 = vmul.f32 %v59_v14, %v57_v0  ;;  %v66_v21 = vmax.f32 %v58_v1, 0.0  ;;  %v68_v22 = vmul.f32 %v60_v15, %v58_v1  ;;  %s112_s6 = sshll.u32 %s212_s1, 4  ;;  %s113_s6 = int_to_ptr.vmem [resolvable:$true] %s112_s6 }
  0x29   :  { %v73_v4 = vsub.f32 0.0, %v71_v2  ;;  %v74_v5 = vsub.f32 0.0, %v72_v3  ;;  %v61_v24 = vmul.f32 9.0, %v59_v14  ;;  %v62_v25 = vmul.f32 9.0, %v60_v15  ;;  %s180_s7 = scalar_lea.vmem %s113_s6, 128  ;;  %p185_p3 = scmp.lt.s32.totalorder %s113_s6, %s113_s6 }
  0x2a   :  { %v69_v28 = vsub.f32 %v65_v17, %v67_v18  ;;  %v70_v31 = vsub.f32 %v66_v21, %v68_v22  ;;  %p181_p2 = scmp.ne.s32.totalorder %s113_s6, %s180_s7  ;;  %p186_p4 = scmp.lt.s32.totalorder %s180_s7, %s180_s7 }
  0x2b   :  { %v75_v6 = vmul.f32 1.442695, %v73_v4  ;;  %v77_v7 = vmul.f32 1.442695, %v74_v5  ;;  %v63_v33 = vadd.f32 1.0, %v61_v24  ;;  %v64_v35 = vadd.f32 1.0, %v62_v25 }
  0x2c   :  { %p187_p5 = por %p186_p4, %p185_p3 }
  0x2d   :  { %128 = vpow2.f32 %v75_v6 }
  0x2e   :  { %130 = vpow2.f32 %v77_v7  ;;  %p188_p6 = pnand %p187_p5, %p181_p2 }
  0x37   :  { %v129_v8 = vpop.eup %128 }
  0x38   :  { %v131_v9 = vpop.eup %130  ;;  %v79_v10 = vadd.f32 1.0, %v129_v8  ;;  %v82_v12 = vmul.f32 -0.5, %v129_v8  ;;  %v85_v19 = vand.u32 2147483647, %v129_v8 }
  0x39   :  { %v88_v11 = vadd.f32 1.0, %v131_v9  ;;  %v91_v13 = vmul.f32 -0.5, %v131_v9  ;;  %v94_v23 = vand.u32 2147483647, %v131_v9 }
  0x3a   :  { %132 = vlog2.f32 %v79_v10  ;;  %v83_v16 = vadd.f32 1.0, %v82_v12  ;;  %vm86_vm0 = vcmp.lt.f32.partialorder %v85_v19, 0.0004427343 }
  0x3b   :  { %134 = vlog2.f32 %v88_v11  ;;  %v92_v20 = vadd.f32 1.0, %v91_v13  ;;  %vm95_vm1 = vcmp.lt.f32.partialorder %v94_v23, 0.0004427343 }
  0x3c   :  { %v84_v26 = vmul.f32 %v129_v8, %v83_v16 }
  0x3d   :  { %v93_v29 = vmul.f32 %v131_v9, %v92_v20 }
  0x44   :  { %v133_v27 = vpop.eup %132 }
  0x45   :  { %v135_v30 = vpop.eup %134  ;;  %v81_v32 = vmul.f32 0.6931472, %v133_v27 }
  0x46   :  { %v90_v34 = vmul.f32 0.6931472, %v135_v30 }
  0x47   :  { %v87_v36 = vsel %vm86_vm0, %v84_v26, %v81_v32 }
  0x48   :  { %v96_v37 = vsel %vm95_vm1, %v93_v29, %v90_v34  ;;  %v97_v38 = vadd.f32 %v87_v36, %v69_v28 }
  0x49   :  { %v98_v39 = vadd.f32 %v96_v37, %v70_v31 }
  0x4a   :  { %v99_v40 = vmul.f32 %v97_v38, %v63_v33 }
  0x4b   :  { %v100_v41 = vmul.f32 %v98_v39, %v64_v35 }
  0x4d   :  { %v101_v42 = vadd.f32 %v100_v41, %v99_v40 }
  0x4f   :  { %105 = vst [vmem:[#allocation7] sm:$0xff] %v101_v42 }
  0x50   :  { %191 = shalt.err (!%p188_p6)
}
  0x51   :  { %s192_s10 = scalar_lea.hbm %s266_s2, 128 }
  0x52   :  { %p193_p7 = scmp.ne.s32.totalorder %s266_s2, %s192_s10  ;;  %p196_p8 = scmp.lt.u32.totalorder %s192_s10, %s266_s2 }
  0x54   :  { %p198_p9 = pnand %p196_p8, %p193_p7 }
  0x56   :  { %201 = shalt.err (!%p198_p9)
}
  0x57   :  { %115 = dma.vmem_to_hbm [thread:$0]  %s113_s6, 128, %s266_s2, [#allocation4]  }
  0x58   :  { %206 = dma.done.wait [#allocation4], 128  }
  0x59   :  { %207 = vsyncadd [#allocation4], 4294967168 }
  0x5a   :  { %119 = vsyncpa [#allocation3], 1 }
  0x5b   :  { %120 = vsyncpa [#allocation6], 1 }
  0x5c   :  { %121 = vsyncpa [#allocation4], 1 }

</bundles_post_ra>
